<compile_context>
chip_gen: v5e
topology: v5e:2x2
jax: 0.10.0
libtpu: 0.0.40
codegen_flags: <defaults>
</compile_context>

<pallas_src>
import functools
import math

import jax
import jax.numpy as jnp
from jax.experimental import pallas as pl
from jax.experimental.pallas import tpu as pltpu


def _neighbor_agg_kernel(x_ref, w_ref, o_ref, *, inv_k, precision):
    # x_ref: (tile_nodes, K, D)   neighbor-feature tile (full K, D per block)
    # w_ref: (D, O_pad)           un-replicated weight (VMEM-resident)
    # o_ref: (tile_nodes, O_pad)  lane-dense output tile
    # Mean over the K (sublane) axis with f32 accumulation, then one small
    # MXU contraction.  No K x flop inflation, no replicated weight.
    xm = jnp.sum(x_ref[...].astype(jnp.float32), axis=1) * inv_k   # (tile, D)
    o_ref[...] = jnp.dot(
        xm.astype(w_ref.dtype),
        w_ref[...],
        precision=precision,
        preferred_element_type=jnp.float32,
    ).astype(o_ref.dtype)


def _round_up(x: int, m: int) -> int:
    return ((x + m - 1) // m) * m


def _sublane_multiple(dtype) -> int:
    # dtype-native sublane multiple: 8 (4-byte), 16 (2-byte), 32 (1-byte)
    return {4: 8, 2: 16, 1: 32}.get(jnp.dtype(dtype).itemsize, 8)


def _default_vmem_limit_bytes() -> int:
    # ~3/4 of physical VMEM, capped at 100 MiB.
    # v7x: 64 MiB -> 48 MiB;  v5e/v6e: 128 MiB -> 96 MiB.
    fallback = 64 * 1024 * 1024
    try:
        cap = int(pltpu.get_tpu_info().vmem_capacity_bytes)
        if cap <= 0:
            cap = fallback
    except Exception:
        cap = fallback
    return min((cap * 3) // 4, 100 * 1024 * 1024)


def neighbor_aggregator(
    neighbors_x: jax.Array,
    weight: jax.Array,
    *,
    tile_nodes: int | None = None,
    precision=jax.lax.Precision.HIGHEST,
    vmem_limit_bytes: int | None = None,
) -> jax.Array:
    """Pallas implementation of NeighborAggregator.forward (aggr_method='mean').

    neighbors_x: (num_src_nodes, num_neighbors, input_dim)
    weight:      (input_dim, output_dim)
    returns:     (num_src_nodes, output_dim) in neighbors_x.dtype
    """
    n, k, d = neighbors_x.shape
    d_w, o = weight.shape
    assert d == d_w, "input_dim mismatch"

    dtype = neighbors_x.dtype
    itemsize = jnp.dtype(dtype).itemsize
    mult = _sublane_multiple(dtype)

    if vmem_limit_bytes is None:
        vmem_limit_bytes = _default_vmem_limit_bytes()

    # ---- lane-dense output: pad output_dim to a multiple of 128 ----
    o_pad = _round_up(o, 128)
    w_kernel = weight.astype(dtype)                    # tiny (D, O) array
    if o_pad != o:
        w_kernel = jnp.pad(w_kernel, ((0, 0), (0, o_pad - o)))

    # ---- VMEM-budgeted node tile (uses the *padded* on-chip layout) ----
    k_sub = _round_up(k, mult)        # sublane padding of the K axis in VMEM
    d_lane = _round_up(d, 128)        # lane padding of the D axis in VMEM
    d_sub = _round_up(d, mult)        # sublane padding of weight rows

    per_row = (2 * k_sub * d_lane * itemsize      # x block, double-buffered
               + k_sub * d_lane * 4               # f32 widened temp for the mean
               + 2 * o_pad * itemsize             # output block, double-buffered
               + d_lane * 4)                      # f32 mean row
    fixed = 2 * d_sub * o_pad * itemsize          # resident weight, counted at 2x

    if tile_nodes is None:
        budget = int(0.8 * vmem_limit_bytes)
        avail = max(budget - fixed, per_row * mult)
        max_tile = max(mult, (avail // per_row) // mult * mult)
        max_tile = min(max_tile, 4096)

        if n <= mult:
            tile_nodes = n                        # single (possibly partial) block
        else:
            steps = pl.cdiv(n, max_tile)
            if steps == 1:
                steps = 2                         # keep both v7x TCs busy
            elif steps % 2 == 1 and steps <= 16:
                steps += 1                        # even split across 2 TCs
            tile_nodes = min(max_tile, _round_up(pl.cdiv(n, steps), mult))
    else:
        tile_nodes = int(tile_nodes)
        if tile_nodes >= n:
            tile_nodes = n
        else:
            tile_nodes = max(mult, _round_up(tile_nodes, mult))

    grid = (pl.cdiv(n, tile_nodes),)   # partial last block handled by Pallas;
                                       # no wrapper-side node padding needed.

    kernel = functools.partial(
        _neighbor_agg_kernel, inv_k=1.0 / k, precision=precision)

    out = pl.pallas_call(
        kernel,
        out_shape=jax.ShapeDtypeStruct((n, o_pad), dtype),
        grid_spec=pltpu.PrefetchScalarGridSpec(
            num_scalar_prefetch=0,
            grid=grid,
            in_specs=[
                # Tile over source nodes; full (K, D) per block (last two dims
                # equal the array dims, so any K / D is legal with no padding).
                pl.BlockSpec((tile_nodes, k, d), lambda i: (i, 0, 0)),
                # Un-replicated weight: constant index_map -> VMEM-resident.
                pl.BlockSpec((d, o_pad), lambda i: (0, 0)),
            ],
            out_specs=pl.BlockSpec((tile_nodes, o_pad), lambda i: (i, 0)),
        ),
        compiler_params=pltpu.CompilerParams(
            dimension_semantics=("parallel",),
            vmem_limit_bytes=int(vmem_limit_bytes),
        ),
    )(neighbors_x, w_kernel)

    # Strip lane padding only when the output dim was actually padded.
    return out[:, :o] if o_pad != o else out


def make_weight(input_dim: int, output_dim: int, key) -> jax.Array:
    """kaiming_uniform_ matching nn.init.kaiming_uniform_ defaults
    (a=0 -> gain=sqrt(2), fan_in = tensor.size(1) = output_dim)."""
    gain = math.sqrt(2.0)
    fan_in = output_dim  # PyTorch fan_in for a (input_dim, output_dim) 2-D tensor
    bound = gain * math.sqrt(3.0 / fan_in)
    return jax.random.uniform(key, (input_dim, output_dim),
                              dtype=jnp.float32, minval=-bound, maxval=bound)


if __name__ == "__main__":
    # Small, module-consistent shapes.
    num_src_nodes = 128
    num_neighbors = 8
    input_dim = 32
    output_dim = 64

    key = jax.random.PRNGKey(0)
    kx, kw = jax.random.split(key)

    neighbors_x = jax.random.normal(
        kx, (num_src_nodes, num_neighbors, input_dim), dtype=jnp.float32)
    weight = make_weight(input_dim, output_dim, kw)

    out = jax.block_until_ready(neighbor_aggregator(neighbors_x, weight))

    # Pure-JAX reference for correctness check.
    ref = jnp.matmul(jnp.mean(neighbors_x, axis=1), weight,
                     precision=jax.lax.Precision.HIGHEST)
    assert out.shape == (num_src_nodes, output_dim)
    assert out.dtype == neighbors_x.dtype
    assert jnp.allclose(out, ref, atol=1e-4, rtol=1e-4), "mismatch vs reference"

    # TODO(synk): aggr_method other than 'mean' raises NotImplementedError in
    # the PyTorch module as well, so only 'mean' is implemented here.
    print("KERNEL_OK")
</pallas_src>

<mosaic_0001>
module attributes {stable_mosaic.version = 11 : i64} {
  func.func @_neighbor_agg_kernel(%arg0: i32, %arg1: memref<64x8x32xf32, #tpu.memory_space<vmem>>, %arg2: memref<32x128xf32, #tpu.memory_space<vmem>>, %arg3: memref<64x128xf32, #tpu.memory_space<vmem>>) attributes {dimension_semantics = [#tpu.dimension_semantics<parallel>], iteration_bounds = array<i64: 2>, scalar_prefetch = 0 : i64, scratch_operands = 0 : i64, tpu.core_type = #tpu.core_type<tc>, window_params = [{transform_indices = @transform_0, window_bounds = array<i64: 64, 8, 32>}, {pipeline_mode = #tpu.pipeline_mode<synchronous>, transform_indices = @transform_1, window_bounds = array<i64: 32, 128>}, {transform_indices = @transform_2, window_bounds = array<i64: 64, 128>}]} {
    %c0 = arith.constant 0 : index
    %c0_0 = arith.constant 0 : index
    %c0_1 = arith.constant 0 : index
    %0 = vector.load %arg1[%c0, %c0_0, %c0_1] : memref<64x8x32xf32, #tpu.memory_space<vmem>>, vector<64x8x32xf32>
    %cst = arith.constant dense<0.000000e+00> : vector<64x32xf32>
    %1 = vector.multi_reduction <add>, %0, %cst [1] : vector<64x8x32xf32> to vector<64x32xf32>
    %cst_2 = arith.constant 1.250000e-01 : f32
    %2 = vector.broadcast %cst_2 : f32 to vector<64x32xf32>
    %3 = arith.mulf %1, %2 : vector<64x32xf32>
    %c0_3 = arith.constant 0 : index
    %c0_4 = arith.constant 0 : index
    %4 = vector.load %arg2[%c0_3, %c0_4] : memref<32x128xf32, #tpu.memory_space<vmem>>, vector<32x128xf32>
    %cst_5 = arith.constant dense<0.000000e+00> : vector<64x128xf32>
    %5 = tpu.matmul %3, %4, %cst_5 {dimension_numbers = #tpu.dot_dimension_numbers<[1], [0], [0], [1], [0, 0, 1, 1], [], []>, precision = #tpu.contract_precision<fp32>} : vector<64x32xf32>, vector<32x128xf32>, vector<64x128xf32> -> vector<64x128xf32>
    %c0_6 = arith.constant 0 : index
    %c0_7 = arith.constant 0 : index
    %6 = vector.load %arg3[%c0_6, %c0_7] : memref<64x128xf32, #tpu.memory_space<vmem>>, vector<64x128xf32>
    tpu.vector_store %arg3[%c0_6, %c0_7], %5 {strides = array<i32>} : memref<64x128xf32, #tpu.memory_space<vmem>>, vector<64x128xf32>,
    return
  }
  func.func @transform_0(%arg0: i32) -> (i32, i32, i32) {
    %c0_i32 = arith.constant 0 : i32
    %c0_i32_0 = arith.constant 0 : i32
    %c0_i32_1 = arith.constant 0 : i32
    return %arg0, %c0_i32, %c0_i32_0 : i32, i32, i32
  }
  func.func @transform_1(%arg0: i32) -> (i32, i32) {
    %c0_i32 = arith.constant 0 : i32
    %c0_i32_0 = arith.constant 0 : i32
    %c0_i32_1 = arith.constant 0 : i32
    return %c0_i32, %c0_i32_0 : i32, i32
  }
  func.func @transform_2(%arg0: i32) -> (i32, i32) {
    %c0_i32 = arith.constant 0 : i32
    %c0_i32_0 = arith.constant 0 : i32
    return %arg0, %c0_i32 : i32, i32
  }
}

</mosaic_0001>

<bundles_post_ra>
// kernel: tpu_custom_call.1
= control target key start
LH: loop header
LB: loop body
LE: loop exit
PB: predicated region body
PF: predicated region fallthrough
CT: control target
= control target key end

     0   :  { %7 = vsyncpa [#allocation3], 0  ;;  %s1964_s0 = inlined_call_operand.vmem [shape: f32[128,8,32], index: 0, kind: input, shape index: {}]   ;;  %s1965_s1 = inlined_call_operand.vmem [shape: f32[32,128], index: 1, kind: input, shape index: {}]   ;;  %s1966_s2 = inlined_call_operand.hbm [shape: f32[128,128], index: 2, kind: output, shape index: {}]  }
   0x1   :  { %9 = vsyncpa [#allocation3 + $0x1], 0  ;;  %s1500_s9 = smov 0   ;;  %s1502_s10 = smov 0  }
   0x2   :  { %s1504_s11 = smov 0   ;;  %s1506_s12 = smov 0  }
   0x3 LB: > { %s1356_s13 = sadd.s32 4294967295, %s1481_s12   ;;  %s1357_s14 = sadd.s32 4294967294, %s1481_s12   ;;  %s1481_s12 = sphi %s1506_s12, %s1972_s12   ;;  %s1477_s11 = sphi %s1504_s11, %s1971_s11   ;;  %s1473_s10 = sphi %s1502_s10, %s1970_s10   ;;  %s1469_s9 = sphi %s1500_s9, %s1969_s9  }
   0x4   : > { %s1523_s15 = sadd.s32 1, %s1481_s12   ;;  %s69_s16 = sadd.s32 1, %s1477_s11 }
   0x5   : > { %s66_s17 = ssub.s32 %s1481_s12, %s1523_s15  ;;  %p79_p0 = scmp.ne.s32.totalorder %s1477_s11, %s1473_s10 }
   0x6   : > { %p67_p1 = scmp.eq.s32.totalorder %s66_s17, 0  ;;  %p80_p2 = scmp.eq.s32.totalorder %s1356_s13, 1 }
   0x7   : > { %p85_p3 = scmp.ne.s32.totalorder %s1473_s10, %s1469_s9  ;;  %p86_p4 = scmp.eq.s32.totalorder %s1357_s14, 1 }
   0x8   : > { %s1533_s18 = scalar_select %p67_p1, %s1477_s11, %s69_s16  }
   0x9   : > { %p1535_p5 = por %p80_p2, %p79_p0  ;;  %p1539_p6 = por %p86_p4, %p85_p3 }
   0xa   : > { %p1360_p7 = scmp.ge.s32.totalorder %s1481_s12, 1  ;;  %p116_p8 = scmp.lt.s32.totalorder %s1481_s12, 3 }
   0xc   : > { %p117_p9 = pnand %p1360_p7, %p116_p8 }
   0xd   : > { %s1554_s27 = sshll.u32 (!%p117_p9), %s1356_s13, 6  ;;  %s135_s7 = sand.u32 (!%p117_p9), 1, %s1473_s10  }
   0xe   : > { %120 = sbr.rel (%p117_p9) target bundleno = 396 (0x18c), region = 28  ;;  %p139_p10 = scmp.lt.s32.totalorder (!%p117_p9), %s1554_s27, 127 }
   0xf   : > { %s1361_s8 = sshll.u32 (!%p117_p9), %s135_s7, 6  ;;  %s1291_s17 = scalar_lea.hbm (!%p117_p9), %s1966_s2, %s1554_s27 }
  0x10   : > { %s1914_s13 = scalar_lea.vmem (!%p117_p9), [#allocation2], %s1361_s8  ;;  %s1294_s22 = sshll.u32 (!%p117_p9), %s1291_s17, 4  ;;  %s1295_s22 = int_to_ptr.hbm [resolvable:$true] %s1294_s22 }
  0x11   : > { %s1292_s21 = sshll.u32 (!%p117_p9), %s1914_s13, 4  ;;  %s1280_s23 = scalar_lea.sflag (!%p117_p9), [#allocation3], %s135_s7  ;;  %s1293_s21 = int_to_ptr.vmem [resolvable:$true] %s1292_s21 }
  0x12   : > { %s1433_s24 = sshra.s32 (!%p117_p9), %s1295_s22, 4  ;;  %s1439_s28 = scalar_lea.hbm (!%p117_p9), %s1966_s2, 128  ;;  %s1434_s24 = int_to_ptr.hbm [resolvable:$true] %s1433_s24 }
  0x13   : > { %v725_v0 = vld [vmem:[%s1965_s1 + $0x18] sm:$0xff]  ;;  %v724_v1 = vld [vmem:[%s1965_s1 + $0x10] sm:$0xff]  ;;  %v723_v2 = vld [vmem:[%s1965_s1 + $0x8] sm:$0xff]  ;;  %s140_s30 = scalar_select %p139_p10, %s1554_s27, 127  ;;  %vm209_vm0 = vcmask 261120   ;;  %vm790_vm1 = vcmask 1041409  }
  0x14   : > { %v1556_v3 = vand.u32 4294901760, %v725_v0  ;;  %v1558_v4 = vand.u32 4294901760, %v724_v1  ;;  %v1560_v5 = vand.u32 4294901760, %v723_v2  ;;  %v722_v6 = vld [vmem:[%s1965_s1] sm:$0xff]  ;;  %vm792_vm2 = vcmask 1042434   ;;  %s1435_s25 = scalar_lea.hbm %s1434_s24, 64  ;;  %p1440_p0 = scmp.lt.s32.totalorder %s1434_s24, %s1966_s2 }
  0x15   : > { %v1566_v7 = vand.u32 4294901760, %v722_v6  ;;  %s1363_s3 = sshll.u32 %s140_s30, 3  ;;  %vm794_vm3 = vcmask 1043459   ;;  %vm796_vm4 = vcmask 1044484   ;;  %vm798_vm5 = vcmask 1045509   ;;  %p1436_p11 = scmp.ne.s32.totalorder %s1434_s24, %s1435_s25 }
  0x16   : > { %1370 = vmatpush.msra.mxu2 %v1556_v3  ;;  %v967_v8 = vsub.f32 %v725_v0, %v1556_v3  ;;  %v973_v9 = vsub.f32 %v724_v1, %v1558_v4  ;;  %v1572_v10 = vsub.f32 %v723_v2, %v1560_v5  ;;  %882 = vmatpush.msra.mxu0 %v1556_v3  ;;  %s1586_s6 = scalar_lea.vmem %s1964_s0, %s1363_s3  ;;  %vm800_vm6 = vcmask 1046534   ;;  %p1441_p1 = scmp.lt.s32.totalorder %s1439_s28, %s1435_s25 }
  0x17   : > { %v1577_v11 = vsub.f32 %v722_v6, %v1566_v7  ;;  %v177_v19 = vld [vmem:[%s1586_s6 + $0x100] sm:$0xff]  ;;  %v178_v20 = vld [vmem:[%s1586_s6 + $0x108] sm:$0xff]  ;;  %v179_v21 = vld [vmem:[%s1586_s6 + $0x110] sm:$0xff]  ;;  %vm802_vm7 = vcmask 1047559   ;;  %p1437_p12 = pnand %p1436_p11, %p1535_p5 }
  0x18   : > { %v968_v12 = vand.u32 4294901760, %v967_v8  ;;  %1371 = vmatpush.msra.mxu2 %v1558_v4  ;;  %v974_v13 = vand.u32 4294901760, %v973_v9  ;;  %v980_v14 = vand.u32 4294901760, %v1572_v10  ;;  %884 = vmatpush.msra.mxu0 %v1558_v4  ;;  %v180_v23 = vld [vmem:[%s1586_s6 + $0x118] sm:$0xff]  ;;  %v181_v24 = vld [vmem:[%s1586_s6 + $0x120] sm:$0xff]  ;;  %v182_v25 = vld [vmem:[%s1586_s6 + $0x128] sm:$0xff]  ;;  %p1442_p2 = por %p1441_p1, %p1440_p0 }
  0x19   : > { %v986_v15 = vand.u32 4294901760, %v1577_v11  ;;  %v434_v26 = vsel %vm209_vm0, %v177_v19, 0.0  ;;  %v441_v27 = vsel %vm209_vm0, %v178_v20, 0.0  ;;  %v448_v28 = vsel %vm209_vm0, %v179_v21, 0.0  ;;  %v183_v34 = vld [vmem:[%s1586_s6 + $0x130] sm:$0xff]  ;;  %v184_v35 = vld [vmem:[%s1586_s6 + $0x138] sm:$0xff]  ;;  %p1438_p13 = pneg %p1437_p12 }
  0x1a   : > { %v969_v16 = vsub.f32 %v967_v8, %v968_v12  ;;  %v975_v17 = vsub.f32 %v973_v9, %v974_v13  ;;  %1372 = vmatpush.msra.mxu2 %v1560_v5  ;;  %v981_v18 = vsub.f32 %v1572_v10, %v980_v14  ;;  %886 = vmatpush.msra.mxu0 %v1560_v5  ;;  %v435_v32 = vrot.slane %v434_v26, 4  ;;  %v185_v19 = vld [vmem:[%s1586_s6 + $0x140] sm:$0xff] }
  0x1b   : > { %v1597_v22 = vsub.f32 %v1577_v11, %v986_v15  ;;  %v442_v36 = vrot.slane %v441_v27, 4  ;;  %v449_v37 = vrot.slane %v448_v28, 4  ;;  %v455_v38 = vsel %vm209_vm0, %v180_v23, 0.0  ;;  %p1443_p3 = pnand %p1442_p2, %p1438_p13 }
  0x1c   : > { %v970_v29 = vand.u32 4294901760, %v969_v16  ;;  %v976_v30 = vand.u32 4294901760, %v975_v17  ;;  %v982_v31 = vand.u32 4294901760, %v981_v18  ;;  %1373 = vmatpush.msra.mxu2 %v1566_v7  ;;  %888 = vmatpush.msra.mxu0 %v1566_v7  ;;  %v436_v39 = vadd.f32 %v435_v32, %v434_v26 }
  0x1d   : > { %v988_v33 = vand.u32 4294901760, %v1597_v22  ;;  %v456_v40 = vrot.slane %v455_v38, 4  ;;  %v462_v41 = vsel %vm209_vm0, %v181_v24, 0.0  ;;  %v469_v42 = vsel %vm209_vm0, %v182_v25, 0.0 }
  0x1e   : > { %1037 = vmatpush.msrb.mxu2 %v967_v8  ;;  %1172 = vmatpush.msrb.mxu0 %v968_v12  ;;  %v443_v43 = vadd.f32 %v442_v36, %v441_v27  ;;  %v450_v44 = vadd.f32 %v449_v37, %v448_v28  ;;  %v463_v45 = vrot.slane %v462_v41, 4  ;;  %v470_v46 = vrot.slane %v469_v42, 4  ;;  %v186_v27 = vld [vmem:[%s1586_s6 + $0x148] sm:$0xff] }
  0x1f   : > { %1374 = vmatpush.msra.mxu3 %v970_v29  ;;  %971 = vmatpush.msra.mxu1 %v970_v29  ;;  %v437_v47 = vrot.slane %v436_v39, 2  ;;  %v457_v48 = vadd.f32 %v456_v40, %v455_v38  ;;  %v476_v49 = vsel %vm209_vm0, %v183_v34, 0.0  ;;  %v483_v50 = vsel %vm209_vm0, %v184_v35, 0.0  ;;  %v188_v38 = vld [vmem:[%s1586_s6 + $0x158] sm:$0xff] }
  0x20   : > { %1040 = vmatpush.msrb.mxu2 %v973_v9  ;;  %1176 = vmatpush.msrb.mxu0 %v974_v13  ;;  %v444_v51 = vrot.slane %v443_v43, 2  ;;  %v451_v52 = vrot.slane %v450_v44, 2  ;;  %v464_v53 = vadd.f32 %v463_v45, %v462_v41  ;;  %v471_v54 = vadd.f32 %v470_v46, %v469_v42  ;;  %v189_v41 = vld [vmem:[%s1586_s6 + $0x160] sm:$0xff] }
  0x21   : > { %1375 = vmatpush.msra.mxu3 %v976_v30  ;;  %977 = vmatpush.msra.mxu1 %v976_v30  ;;  %v438_v55 = vadd.f32 %v437_v47, %v436_v39  ;;  %v458_v56 = vrot.slane %v457_v48, 2  ;;  %v477_v57 = vrot.slane %v476_v49, 4  ;;  %v484_v58 = vrot.slane %v483_v50, 4 }
  0x22   : > { %1043 = vmatpush.msrb.mxu2 %v1572_v10  ;;  %1180 = vmatpush.msrb.mxu0 %v980_v14  ;;  %v445_v59 = vadd.f32 %v444_v51, %v443_v43  ;;  %v452_v60 = vadd.f32 %v451_v52, %v450_v44  ;;  %v465_v61 = vrot.slane %v464_v53, 2  ;;  %v472_v62 = vrot.slane %v471_v54, 2 }
  0x23   : > { %1376 = vmatpush.msra.mxu3 %v982_v31  ;;  %983 = vmatpush.msra.mxu1 %v982_v31  ;;  %v439_v63 = vrot.slane %v438_v55, 1  ;;  %v459_v0 = vadd.f32 %v458_v56, %v457_v48  ;;  %v478_v1 = vadd.f32 %v477_v57, %v476_v49  ;;  %v485_v2 = vadd.f32 %v484_v58, %v483_v50  ;;  %v187_v31 = vld [vmem:[%s1586_s6 + $0x150] sm:$0xff]  ;;  %v190_v49 = vld [vmem:[%s1586_s6 + $0x168] sm:$0xff] }
  0x24   : > { %1046 = vmatpush.msrb.mxu2 %v1577_v11  ;;  %1184 = vmatpush.msrb.mxu0 %v986_v15  ;;  %v446_v6 = vrot.slane %v445_v59, 1  ;;  %v453_v8 = vrot.slane %v452_v60, 1  ;;  %v466_v9 = vadd.f32 %v465_v61, %v464_v53  ;;  %v473_v10 = vadd.f32 %v472_v62, %v471_v54  ;;  %v191_v58 = vld [vmem:[%s1586_s6 + $0x170] sm:$0xff] }
  0x25   : > { %1377 = vmatpush.msra.mxu3 %v988_v33  ;;  %989 = vmatpush.msra.mxu1 %v988_v33  ;;  %v440_v12 = vadd.f32 %v439_v63, %v438_v55  ;;  %v460_v11 = vrot.slane %v459_v0, 1  ;;  %v479_v13 = vrot.slane %v478_v1, 2  ;;  %v486_v14 = vrot.slane %v485_v2, 2 }
  0x26   : > { %v447_v15 = vadd.f32 %v446_v6, %v445_v59  ;;  %v454_v16 = vadd.f32 %v453_v8, %v452_v60  ;;  %v467_v17 = vrot.slane %v466_v9, 1  ;;  %v474_v18 = vrot.slane %v473_v10, 1 }
  0x27   : > { %1101 = vmatpush.msrb.mxu3 %v1556_v3  ;;  %1231 = vmatpush.msrb.mxu1 %v1556_v3  ;;  %v461_v20 = vadd.f32 %v460_v11, %v459_v0  ;;  %v480_v21 = vadd.f32 %v479_v13, %v478_v1  ;;  %v487_v22 = vadd.f32 %v486_v14, %v485_v2  ;;  %v690_v3 = vmul.f32 0.125, %v440_v12 }
  0x28   : > { %v468_v23 = vadd.f32 %v467_v17, %v466_v9  ;;  %v475_v24 = vadd.f32 %v474_v18, %v473_v10  ;;  %v691_v25 = vmul.f32 0.125, %v447_v15  ;;  %v692_v26 = vmul.f32 0.125, %v454_v16  ;;  %v192_v10 = vld [vmem:[%s1586_s6 + $0x178] sm:$0xff] }
  0x29   : > { %1103 = vmatpush.msrb.mxu3 %v1558_v4  ;;  %1233 = vmatpush.msrb.mxu1 %v1558_v4  ;;  %v481_v28 = vrot.slane %v480_v21, 1  ;;  %v488_v29 = vrot.slane %v487_v22, 1  ;;  %v693_v30 = vmul.f32 0.125, %v461_v20  ;;  %v490_v4 = vsel %vm209_vm0, %v185_v19, 0.0 }
  0x2a   : > { %v694_v32 = vmul.f32 0.125, %v468_v23  ;;  %v695_v33 = vmul.f32 0.125, %v475_v24  ;;  %v825_v34 = vsel %vm790_vm1, %v691_v25, %v690_v3  ;;  %v491_v35 = vrot.slane %v490_v4, 4 }
  0x2b   : > { %1105 = vmatpush.msrb.mxu3 %v1560_v5  ;;  %1235 = vmatpush.msrb.mxu1 %v1560_v5  ;;  %v482_v36 = vadd.f32 %v481_v28, %v480_v21  ;;  %v489_v37 = vadd.f32 %v488_v29, %v487_v22  ;;  %v826_v5 = vsel %vm792_vm2, %v692_v26, %v825_v34  ;;  %v497_v39 = vsel %vm209_vm0, %v186_v27, 0.0 }
  0x2c   : > { %v827_v40 = vsel %vm794_vm3, %v693_v30, %v826_v5  ;;  %v492_v42 = vadd.f32 %v491_v35, %v490_v4  ;;  %v498_v43 = vrot.slane %v497_v39, 4  ;;  %v504_v44 = vsel %vm209_vm0, %v187_v31, 0.0 }
  0x2d   : > { %1107 = vmatpush.msrb.mxu3 %v1566_v7  ;;  %1237 = vmatpush.msrb.mxu1 %v1566_v7  ;;  %v696_v45 = vmul.f32 0.125, %v482_v36  ;;  %v697_v46 = vmul.f32 0.125, %v489_v37  ;;  %v828_v7 = vsel %vm796_vm4, %v694_v32, %v827_v40  ;;  %v505_v47 = vrot.slane %v504_v44, 4  ;;  %v145_v37 = vld [vmem:[%s1586_s6] sm:$0xff] }
  0x2e   : > { %v829_v48 = vsel %vm798_vm5, %v695_v33, %v828_v7  ;;  %v493_v50 = vrot.slane %v492_v42, 2  ;;  %v499_v51 = vadd.f32 %v498_v43, %v497_v39  ;;  %v511_v52 = vsel %vm209_vm0, %v188_v38, 0.0 }
  0x2f   : > { %v830_v53 = vsel %vm800_vm6, %v696_v45, %v829_v48  ;;  %v506_v54 = vadd.f32 %v505_v47, %v504_v44  ;;  %v512_v55 = vrot.slane %v511_v52, 4  ;;  %v518_v56 = vsel %vm209_vm0, %v189_v41, 0.0  ;;  %v146_v45 = vld [vmem:[%s1586_s6 + $0x8] sm:$0xff] }
  0x30   : > { %v831_v57 = vsel %vm802_vm7, %v697_v46, %v830_v53  ;;  %v494_v59 = vadd.f32 %v493_v50, %v492_v42  ;;  %v500_v60 = vrot.slane %v499_v51, 2  ;;  %v519_v61 = vrot.slane %v518_v56, 4  ;;  %v147_v46 = vld [vmem:[%s1586_s6 + $0x10] sm:$0xff]  ;;  %v148_v53 = vld [vmem:[%s1586_s6 + $0x18] sm:$0xff] }
  0x31   : > { %v861_v62 = vsel %vm209_vm0, %v831_v57, 0  ;;  %v507_v63 = vrot.slane %v506_v54, 2  ;;  %v513_v0 = vadd.f32 %v512_v55, %v511_v52  ;;  %v525_v1 = vsel %vm209_vm0, %v190_v49, 0.0 }
  0x32   : > { %v1648_v2 = vand.u32 4294901760, %v861_v62  ;;  %v495_v6 = vrot.slane %v494_v59, 1  ;;  %v501_v8 = vadd.f32 %v500_v60, %v499_v51  ;;  %v520_v9 = vadd.f32 %v519_v61, %v518_v56 }
  0x33   : > { %v508_v12 = vadd.f32 %v507_v63, %v506_v54  ;;  %v514_v11 = vrot.slane %v513_v0, 2  ;;  %v526_v13 = vrot.slane %v525_v1, 4  ;;  %v532_v14 = vsel %vm209_vm0, %v191_v58, 0.0  ;;  %v149_v54 = vld [vmem:[%s1586_s6 + $0x20] sm:$0xff] }
  0x34   : > { %v1653_v15 = vsub.f32 %v861_v62, %v1648_v2  ;;  %1007 = vmatmul.f32.vlgmr.msra.gmra.mxu3 %v1648_v2  ;;  %v496_v16 = vadd.f32 %v495_v6, %v494_v59  ;;  %v502_v17 = vrot.slane %v501_v8, 1  ;;  %v521_v18 = vrot.slane %v520_v9, 2 }
  0x35   : > { %v509_v19 = vrot.slane %v508_v12, 1  ;;  %v515_v20 = vadd.f32 %v514_v11, %v513_v0  ;;  %v527_v21 = vadd.f32 %v526_v13, %v525_v1  ;;  %v533_v22 = vrot.slane %v532_v14, 4  ;;  %v150_v1 = vld [vmem:[%s1586_s6 + $0x28] sm:$0xff] }
  0x36   : > { %v923_v3 = vand.u32 4294901760, %v1653_v15  ;;  %v503_v23 = vadd.f32 %v502_v17, %v501_v8  ;;  %v522_v24 = vadd.f32 %v521_v18, %v520_v9  ;;  %v539_v25 = vsel %vm209_vm0, %v192_v10, 0.0 }
  0x37   : > { %v510_v26 = vadd.f32 %v509_v19, %v508_v12  ;;  %v516_v27 = vrot.slane %v515_v20, 1  ;;  %v528_v28 = vrot.slane %v527_v21, 2  ;;  %v534_v29 = vadd.f32 %v533_v22, %v532_v14 }
  0x38   : > { %v924_v30 = vsub.f32 %v1653_v15, %v923_v3  ;;  %v523_v31 = vrot.slane %v522_v24, 1  ;;  %v540_v4 = vrot.slane %v539_v25, 4  ;;  %v698_v32 = vmul.f32 0.125, %v496_v16  ;;  %v151_v16 = vld [vmem:[%s1586_s6 + $0x30] sm:$0xff] }
  0x39   : > { %v517_v33 = vadd.f32 %v516_v27, %v515_v20  ;;  %v529_v34 = vadd.f32 %v528_v28, %v527_v21  ;;  %v535_v35 = vrot.slane %v534_v29, 2  ;;  %v699_v36 = vmul.f32 0.125, %v503_v23 }
  0x3a   : > { %v925_v5 = vand.u32 4294901760, %v924_v30  ;;  %v524_v38 = vadd.f32 %v523_v31, %v522_v24  ;;  %v541_v39 = vadd.f32 %v540_v4, %v539_v25  ;;  %v700_v40 = vmul.f32 0.125, %v510_v26 }
  0x3b   : > { %v530_v41 = vrot.slane %v529_v34, 1  ;;  %v536_v42 = vadd.f32 %v535_v35, %v534_v29  ;;  %v701_v43 = vmul.f32 0.125, %v517_v33  ;;  %v832_v44 = vsel %vm790_vm1, %v699_v36, %v698_v32  ;;  %v152_v32 = vld [vmem:[%s1586_s6 + $0x38] sm:$0xff] }
  0x3c   : > { %926 = vmatmul.f32.vlgmr.msra.gmra.mxu2 %v925_v5  ;;  %v542_v7 = vrot.slane %v541_v39, 2  ;;  %v702_v47 = vmul.f32 0.125, %v524_v38  ;;  %v833_v48 = vsel %vm792_vm2, %v700_v40, %v832_v44  ;;  %v210_v49 = vsel %vm209_vm0, %v145_v37, 0.0 }
  0x3d   : > { %v531_v50 = vadd.f32 %v530_v41, %v529_v34  ;;  %v537_v51 = vrot.slane %v536_v42, 1  ;;  %v834_v52 = vsel %vm794_vm3, %v701_v43, %v833_v48  ;;  %v211_v55 = vrot.slane %v210_v49, 4 }
  0x3e   : > { %v543_v56 = vadd.f32 %v542_v7, %v541_v39  ;;  %v835_v57 = vsel %vm796_vm4, %v702_v47, %v834_v52  ;;  %v217_v58 = vsel %vm209_vm0, %v146_v45, 0.0  ;;  %v224_v59 = vsel %vm209_vm0, %v147_v46, 0.0 }
  0x3f   : > { %v538_v60 = vadd.f32 %v537_v51, %v536_v42  ;;  %v703_v61 = vmul.f32 0.125, %v531_v50  ;;  %v212_v62 = vadd.f32 %v211_v55, %v210_v49  ;;  %v218_v63 = vrot.slane %v217_v58, 4 }
  0x40   : > { %v544_v0 = vrot.slane %v543_v56, 1  ;;  %v225_v6 = vrot.slane %v224_v59, 4  ;;  %v231_v8 = vsel %vm209_vm0, %v148_v53, 0.0  ;;  %v238_v9 = vsel %vm209_vm0, %v149_v54, 0.0 }
  0x41   : > { %v704_v10 = vmul.f32 0.125, %v538_v60  ;;  %v836_v12 = vsel %vm798_vm5, %v703_v61, %v835_v57  ;;  %v213_v11 = vrot.slane %v212_v62, 2  ;;  %v219_v13 = vadd.f32 %v218_v63, %v217_v58  ;;  %v194_v63 = vld [vmem:[%s1586_s6 + $0x188] sm:$0xff] }
  0x42   : > { %v545_v14 = vadd.f32 %v544_v0, %v543_v56  ;;  %v226_v17 = vadd.f32 %v225_v6, %v224_v59  ;;  %v232_v18 = vrot.slane %v231_v8, 4  ;;  %v239_v19 = vrot.slane %v238_v9, 4 }
  0x43   : > { %v837_v20 = vsel %vm800_vm6, %v704_v10, %v836_v12  ;;  %v214_v21 = vadd.f32 %v213_v11, %v212_v62  ;;  %v220_v22 = vrot.slane %v219_v13, 2  ;;  %v245_v23 = vsel %vm209_vm0, %v150_v1, 0.0  ;;  %v193_v62 = vld [vmem:[%s1586_s6 + $0x180] sm:$0xff] }
  0x44   : > { %v705_v24 = vmul.f32 0.125, %v545_v14  ;;  %v227_v25 = vrot.slane %v226_v17, 2  ;;  %v233_v26 = vadd.f32 %v232_v18, %v231_v8  ;;  %v240_v27 = vadd.f32 %v239_v19, %v238_v9  ;;  %v196_v14 = vld [vmem:[%s1586_s6 + $0x198] sm:$0xff] }
  0x45   : > { %v215_v28 = vrot.slane %v214_v21, 1  ;;  %v221_v29 = vadd.f32 %v220_v22, %v219_v13  ;;  %v246_v30 = vrot.slane %v245_v23, 4  ;;  %v252_v31 = vsel %vm209_vm0, %v151_v16, 0.0  ;;  %v195_v13 = vld [vmem:[%s1586_s6 + $0x190] sm:$0xff] }
  0x46   : > { %v838_v4 = vsel %vm802_vm7, %v705_v24, %v837_v20  ;;  %v228_v33 = vadd.f32 %v227_v25, %v226_v17  ;;  %v234_v34 = vrot.slane %v233_v26, 2  ;;  %v241_v35 = vrot.slane %v240_v27, 2  ;;  %v197_v24 = vld [vmem:[%s1586_s6 + $0x1a0] sm:$0xff] }
  0x47   : > { %v863_v36 = vsel %vm209_vm0, %v838_v4, 0  ;;  %v216_v37 = vadd.f32 %v215_v28, %v214_v21  ;;  %v222_v5 = vrot.slane %v221_v29, 1  ;;  %v247_v38 = vadd.f32 %v246_v30, %v245_v23  ;;  %v198_v4 = vld [vmem:[%s1586_s6 + $0x1a8] sm:$0xff] }
  0x48   : > { %v1684_v39 = vand.u32 4294901760, %v863_v36  ;;  %v229_v40 = vrot.slane %v228_v33, 1  ;;  %v235_v41 = vadd.f32 %v234_v34, %v233_v26  ;;  %v242_v42 = vadd.f32 %v241_v35, %v240_v27 }
  0x49   : > { %v223_v43 = vadd.f32 %v222_v5, %v221_v29  ;;  %v248_v44 = vrot.slane %v247_v38, 2  ;;  %v253_v45 = vrot.slane %v252_v31, 4  ;;  %v259_v46 = vsel %vm209_vm0, %v152_v32, 0.0 }
  0x4a   : > { %v1688_v7 = vsub.f32 %v863_v36, %v1684_v39  ;;  %1011 = vmatmul.f32.gmra.mxu3 %v1684_v39  ;;  %v230_v47 = vadd.f32 %v229_v40, %v228_v33  ;;  %v236_v48 = vrot.slane %v235_v41, 1  ;;  %v243_v49 = vrot.slane %v242_v42, 1 }
  0x4b   : > { %v249_v50 = vadd.f32 %v248_v44, %v247_v38  ;;  %v254_v51 = vadd.f32 %v253_v45, %v252_v31  ;;  %v260_v52 = vrot.slane %v259_v46, 4  ;;  %v658_v53 = vmul.f32 0.125, %v216_v37 }
  0x4c   : > { %v931_v54 = vand.u32 4294901760, %v1688_v7  ;;  %v237_v55 = vadd.f32 %v236_v48, %v235_v41  ;;  %v244_v56 = vadd.f32 %v243_v49, %v242_v42  ;;  %v659_v57 = vmul.f32 0.125, %v223_v43  ;;  %v199_v41 = vld [vmem:[%s1586_s6 + $0x1b0] sm:$0xff] }
  0x4d   : > { %v250_v58 = vrot.slane %v249_v50, 1  ;;  %v255_v59 = vrot.slane %v254_v51, 2  ;;  %v261_v60 = vadd.f32 %v260_v52, %v259_v46  ;;  %v660_v61 = vmul.f32 0.125, %v230_v47 }
  0x4e   : > { %v932_v0 = vsub.f32 %v1688_v7, %v931_v54  ;;  %v661_v1 = vmul.f32 0.125, %v237_v55  ;;  %v662_v6 = vmul.f32 0.125, %v244_v56  ;;  %v791_v8 = vsel %vm790_vm1, %v659_v57, %v658_v53 }
  0x4f   : > { %v251_v9 = vadd.f32 %v250_v58, %v249_v50  ;;  %v256_v10 = vadd.f32 %v255_v59, %v254_v51  ;;  %v262_v12 = vrot.slane %v261_v60, 2  ;;  %v793_v11 = vsel %vm792_vm2, %v660_v61, %v791_v8 }
  0x50   : > { %v933_v16 = vand.u32 4294901760, %v932_v0  ;;  %v795_v17 = vsel %vm794_vm3, %v661_v1, %v793_v11  ;;  %v546_v18 = vsel %vm209_vm0, %v193_v62, 0.0  ;;  %v553_v19 = vsel %vm209_vm0, %v194_v63, 0.0  ;;  %v200_v0 = vld [vmem:[%s1586_s6 + $0x1b8] sm:$0xff] }
  0x51   : > { %v257_v20 = vrot.slane %v256_v10, 1  ;;  %v263_v21 = vadd.f32 %v262_v12, %v261_v60  ;;  %v663_v22 = vmul.f32 0.125, %v251_v9  ;;  %v797_v23 = vsel %vm796_vm4, %v662_v6, %v795_v17 }
  0x52   : > { %934 = vmatmul.f32.gmra.mxu2 %v933_v16  ;;  %v547_v25 = vrot.slane %v546_v18, 4  ;;  %v554_v26 = vrot.slane %v553_v19, 4  ;;  %v560_v27 = vsel %vm209_vm0, %v195_v13, 0.0  ;;  %v567_v28 = vsel %vm209_vm0, %v196_v14, 0.0 }
  0x53   : > { %v258_v29 = vadd.f32 %v257_v20, %v256_v10  ;;  %v264_v30 = vrot.slane %v263_v21, 1  ;;  %v799_v31 = vsel %vm798_vm5, %v663_v22, %v797_v23  ;;  %v561_v32 = vrot.slane %v560_v27, 4 }
  0x54   : > { %v548_v33 = vadd.f32 %v547_v25, %v546_v18  ;;  %v555_v34 = vadd.f32 %v554_v26, %v553_v19  ;;  %v568_v35 = vrot.slane %v567_v28, 4  ;;  %v574_v36 = vsel %vm209_vm0, %v197_v24, 0.0  ;;  %v153_v26 = vld [vmem:[%s1586_s6 + $0x40] sm:$0xff] }
  0x55   : > { %v265_v37 = vadd.f32 %v264_v30, %v263_v21  ;;  %v664_v5 = vmul.f32 0.125, %v258_v29  ;;  %v562_v38 = vadd.f32 %v561_v32, %v560_v27  ;;  %v575_v40 = vrot.slane %v574_v36, 4  ;;  %v154_v27 = vld [vmem:[%s1586_s6 + $0x48] sm:$0xff] }
  0x56   : > { %v549_v42 = vrot.slane %v548_v33, 2  ;;  %v556_v43 = vrot.slane %v555_v34, 2  ;;  %v569_v44 = vadd.f32 %v568_v35, %v567_v28  ;;  %v581_v45 = vsel %vm209_vm0, %v198_v4, 0.0 }
  0x57   : > { %v665_v46 = vmul.f32 0.125, %v265_v37  ;;  %v801_v47 = vsel %vm800_vm6, %v664_v5, %v799_v31  ;;  %v563_v48 = vrot.slane %v562_v38, 2  ;;  %v576_v49 = vadd.f32 %v575_v40, %v574_v36  ;;  %v155_v37 = vld [vmem:[%s1586_s6 + $0x50] sm:$0xff] }
  0x58   : > { %v550_v50 = vadd.f32 %v549_v42, %v548_v33  ;;  %v557_v51 = vadd.f32 %v556_v43, %v555_v34  ;;  %v570_v52 = vrot.slane %v569_v44, 2  ;;  %v582_v53 = vrot.slane %v581_v45, 4 }
  0x59   : > { %v803_v55 = vsel %vm802_vm7, %v665_v46, %v801_v47  ;;  %v564_v56 = vadd.f32 %v563_v48, %v562_v38  ;;  %v577_v57 = vrot.slane %v576_v49, 2  ;;  %v588_v58 = vsel %vm209_vm0, %v199_v41, 0.0  ;;  %v156_v46 = vld [vmem:[%s1586_s6 + $0x58] sm:$0xff]  ;;  %v157_v47 = vld [vmem:[%s1586_s6 + $0x60] sm:$0xff] }
  0x5a   : > { %v853_v59 = vsel %vm209_vm0, %v803_v55, 0  ;;  %v551_v60 = vrot.slane %v550_v50, 1  ;;  %v558_v61 = vrot.slane %v557_v51, 1  ;;  %v571_v62 = vadd.f32 %v570_v52, %v569_v44 }
  0x5b   : > { %v1717_v63 = vand.u32 4294901760, %v853_v59  ;;  %v565_v1 = vrot.slane %v564_v56, 1  ;;  %v578_v6 = vadd.f32 %v577_v57, %v576_v49  ;;  %v583_v8 = vadd.f32 %v582_v53, %v581_v45 }
  0x5c   : > { %v552_v9 = vadd.f32 %v551_v60, %v550_v50  ;;  %v559_v10 = vadd.f32 %v558_v61, %v557_v51  ;;  %v572_v12 = vrot.slane %v571_v62, 1  ;;  %v589_v11 = vrot.slane %v588_v58, 4 }
  0x5d   : > { %v1721_v13 = vsub.f32 %v853_v59, %v1717_v63  ;;  %991 = vmatmul.f32.vlgmr.msra.gmra.mxu1 %v1717_v63  ;;  %v566_v14 = vadd.f32 %v565_v1, %v564_v56  ;;  %v579_v16 = vrot.slane %v578_v6, 1  ;;  %v584_v17 = vrot.slane %v583_v8, 2  ;;  %v158_v56 = vld [vmem:[%s1586_s6 + $0x68] sm:$0xff] }
  0x5e   : > { %v573_v18 = vadd.f32 %v572_v12, %v571_v62  ;;  %v590_v19 = vadd.f32 %v589_v11, %v588_v58  ;;  %v595_v20 = vsel %vm209_vm0, %v200_v0, 0.0  ;;  %v706_v21 = vmul.f32 0.125, %v552_v9  ;;  %v159_v12 = vld [vmem:[%s1586_s6 + $0x70] sm:$0xff] }
  0x5f   : > { %v891_v22 = vand.u32 4294901760, %v1721_v13  ;;  %v580_v23 = vadd.f32 %v579_v16, %v578_v6  ;;  %v585_v24 = vadd.f32 %v584_v17, %v583_v8  ;;  %v596_v25 = vrot.slane %v595_v20, 4 }
  0x60   : > { %v591_v28 = vrot.slane %v590_v19, 2  ;;  %v707_v29 = vmul.f32 0.125, %v559_v10  ;;  %v708_v30 = vmul.f32 0.125, %v566_v14  ;;  %v709_v31 = vmul.f32 0.125, %v573_v18 }
  0x61   : > { %v892_v4 = vsub.f32 %v1721_v13, %v891_v22  ;;  %v586_v32 = vrot.slane %v585_v24, 1  ;;  %v597_v33 = vadd.f32 %v596_v25, %v595_v20  ;;  %v710_v34 = vmul.f32 0.125, %v580_v23 }
  0x62   : > { %v592_v35 = vadd.f32 %v591_v28, %v590_v19  ;;  %v839_v36 = vsel %vm790_vm1, %v707_v29, %v706_v21  ;;  %v266_v5 = vsel %vm209_vm0, %v153_v26, 0.0  ;;  %v273_v38 = vsel %vm209_vm0, %v154_v27, 0.0 }
  0x63   : > { %v893_v40 = vand.u32 4294901760, %v892_v4  ;;  %v587_v41 = vadd.f32 %v586_v32, %v585_v24  ;;  %v598_v42 = vrot.slane %v597_v33, 2  ;;  %v840_v43 = vsel %vm792_vm2, %v708_v30, %v839_v36 }
  0x64   : > { %v593_v44 = vrot.slane %v592_v35, 1  ;;  %v841_v45 = vsel %vm794_vm3, %v709_v31, %v840_v43  ;;  %v267_v48 = vrot.slane %v266_v5, 4  ;;  %v274_v49 = vrot.slane %v273_v38, 4  ;;  %v160_v31 = vld [vmem:[%s1586_s6 + $0x78] sm:$0xff] }
  0x65   : > { %894 = vmatmul.f32.vlgmr.msra.gmra.mxu0 %v893_v40  ;;  %v599_v50 = vadd.f32 %v598_v42, %v597_v33  ;;  %v711_v51 = vmul.f32 0.125, %v587_v41  ;;  %v842_v52 = vsel %vm796_vm4, %v710_v34, %v841_v45  ;;  %v280_v53 = vsel %vm209_vm0, %v155_v37, 0.0 }
  0x66   : > { %v594_v55 = vadd.f32 %v593_v44, %v592_v35  ;;  %v268_v57 = vadd.f32 %v267_v48, %v266_v5  ;;  %v275_v58 = vadd.f32 %v274_v49, %v273_v38  ;;  %v281_v59 = vrot.slane %v280_v53, 4 }
  0x67   : > { %v600_v60 = vrot.slane %v599_v50, 1  ;;  %v843_v61 = vsel %vm798_vm5, %v711_v51, %v842_v52  ;;  %v287_v62 = vsel %vm209_vm0, %v156_v46, 0.0  ;;  %v294_v0 = vsel %vm209_vm0, %v157_v47, 0.0 }
  0x68   : > { %v712_v1 = vmul.f32 0.125, %v594_v55  ;;  %v269_v6 = vrot.slane %v268_v57, 2  ;;  %v276_v8 = vrot.slane %v275_v58, 2  ;;  %v282_v9 = vadd.f32 %v281_v59, %v280_v53 }
  0x69   : > { %v601_v10 = vadd.f32 %v600_v60, %v599_v50  ;;  %v288_v11 = vrot.slane %v287_v62, 4  ;;  %v295_v14 = vrot.slane %v294_v0, 4  ;;  %v301_v16 = vsel %vm209_vm0, %v158_v56, 0.0  ;;  %v201_v50 = vld [vmem:[%s1586_s6 + $0x1c0] sm:$0xff] }
  0x6a   : > { %v844_v17 = vsel %vm800_vm6, %v712_v1, %v843_v61  ;;  %v270_v18 = vadd.f32 %v269_v6, %v268_v57  ;;  %v277_v19 = vadd.f32 %v276_v8, %v275_v58  ;;  %v283_v20 = vrot.slane %v282_v9, 2 }
  0x6b   : > { %v713_v21 = vmul.f32 0.125, %v601_v10  ;;  %v289_v23 = vadd.f32 %v288_v11, %v287_v62  ;;  %v296_v24 = vadd.f32 %v295_v14, %v294_v0  ;;  %v302_v25 = vrot.slane %v301_v16, 4  ;;  %v202_v0 = vld [vmem:[%s1586_s6 + $0x1c8] sm:$0xff] }
  0x6c   : > { %v271_v26 = vrot.slane %v270_v18, 1  ;;  %v278_v27 = vrot.slane %v277_v19, 1  ;;  %v284_v28 = vadd.f32 %v283_v20, %v282_v9  ;;  %v308_v29 = vsel %vm209_vm0, %v159_v12, 0.0 }
  0x6d   : > { %v845_v30 = vsel %vm802_vm7, %v713_v21, %v844_v17  ;;  %v290_v4 = vrot.slane %v289_v23, 2  ;;  %v297_v32 = vrot.slane %v296_v24, 2  ;;  %v303_v33 = vadd.f32 %v302_v25, %v301_v16  ;;  %v203_v16 = vld [vmem:[%s1586_s6 + $0x1d0] sm:$0xff]  ;;  %v204_v17 = vld [vmem:[%s1586_s6 + $0x1d8] sm:$0xff] }
  0x6e   : > { %v865_v34 = vsel %vm209_vm0, %v845_v30, 0  ;;  %v272_v35 = vadd.f32 %v271_v26, %v270_v18  ;;  %v279_v36 = vadd.f32 %v278_v27, %v277_v19  ;;  %v285_v37 = vrot.slane %v284_v28, 1  ;;  %v205_v27 = vld [vmem:[%s1586_s6 + $0x1e0] sm:$0xff] }
  0x6f   : > { %v1752_v5 = vand.u32 4294901760, %v865_v34  ;;  %v291_v38 = vadd.f32 %v290_v4, %v289_v23  ;;  %v298_v40 = vadd.f32 %v297_v32, %v296_v24  ;;  %v304_v41 = vrot.slane %v303_v33, 2 }
  0x70   : > { %v286_v42 = vadd.f32 %v285_v37, %v284_v28  ;;  %v309_v43 = vrot.slane %v308_v29, 4  ;;  %v315_v44 = vsel %vm209_vm0, %v160_v31, 0.0  ;;  %v666_v45 = vmul.f32 0.125, %v272_v35  ;;  %v206_v28 = vld [vmem:[%s1586_s6 + $0x1e8] sm:$0xff] }
  0x71   : > { %v1756_v46 = vsub.f32 %v865_v34, %v1752_v5  ;;  %1015 = vmatmul.f32.gmra.mxu3 %v1752_v5  ;;  %v292_v47 = vrot.slane %v291_v38, 1  ;;  %v299_v48 = vrot.slane %v298_v40, 1  ;;  %v305_v49 = vadd.f32 %v304_v41, %v303_v33 }
  0x72   : > { %v310_v51 = vadd.f32 %v309_v43, %v308_v29  ;;  %v316_v52 = vrot.slane %v315_v44, 4  ;;  %v667_v53 = vmul.f32 0.125, %v279_v36  ;;  %v668_v55 = vmul.f32 0.125, %v286_v42 }
  0x73   : > { %v939_v56 = vand.u32 4294901760, %v1756_v46  ;;  %v293_v57 = vadd.f32 %v292_v47, %v291_v38  ;;  %v300_v58 = vadd.f32 %v299_v48, %v298_v40  ;;  %v306_v59 = vrot.slane %v305_v49, 1  ;;  %v207_v47 = vld [vmem:[%s1586_s6 + $0x1f0] sm:$0xff] }
  0x74   : > { %v311_v60 = vrot.slane %v310_v51, 2  ;;  %v317_v61 = vadd.f32 %v316_v52, %v315_v44  ;;  %v804_v62 = vsel %vm790_vm1, %v667_v53, %v666_v45  ;;  %v602_v1 = vsel %vm209_vm0, %v201_v50, 0.0 }
  0x75   : > { %v940_v6 = vsub.f32 %v1756_v46, %v939_v56  ;;  %v307_v8 = vadd.f32 %v306_v59, %v305_v49  ;;  %v669_v9 = vmul.f32 0.125, %v293_v57  ;;  %v670_v10 = vmul.f32 0.125, %v300_v58 }
  0x76   : > { %v312_v12 = vadd.f32 %v311_v60, %v310_v51  ;;  %v318_v11 = vrot.slane %v317_v61, 2  ;;  %v805_v14 = vsel %vm792_vm2, %v668_v55, %v804_v62  ;;  %v603_v18 = vrot.slane %v602_v1, 4 }
  0x77   : > { %v941_v19 = vand.u32 4294901760, %v940_v6  ;;  %v671_v20 = vmul.f32 0.125, %v307_v8  ;;  %v806_v21 = vsel %vm794_vm3, %v669_v9, %v805_v14  ;;  %v609_v23 = vsel %vm209_vm0, %v202_v0, 0.0  ;;  %v208_v0 = vld [vmem:[%s1586_s6 + $0x1f8] sm:$0xff] }
  0x78   : > { %v313_v24 = vrot.slane %v312_v12, 1  ;;  %v319_v25 = vadd.f32 %v318_v11, %v317_v61  ;;  %v807_v26 = vsel %vm796_vm4, %v670_v10, %v806_v21  ;;  %v604_v29 = vadd.f32 %v603_v18, %v602_v1 }
  0x79   : > { %942 = vmatmul.f32.gmra.mxu2 %v941_v19  ;;  %v808_v30 = vsel %vm798_vm5, %v671_v20, %v807_v26  ;;  %v610_v31 = vrot.slane %v609_v23, 4  ;;  %v616_v4 = vsel %vm209_vm0, %v203_v16, 0.0  ;;  %v623_v32 = vsel %vm209_vm0, %v204_v17, 0.0 }
  0x7a   : > { %v314_v33 = vadd.f32 %v313_v24, %v312_v12  ;;  %v320_v34 = vrot.slane %v319_v25, 1  ;;  %v605_v35 = vrot.slane %v604_v29, 2  ;;  %v617_v36 = vrot.slane %v616_v4, 4 }
  0x7b   : > { %v611_v37 = vadd.f32 %v610_v31, %v609_v23  ;;  %v624_v38 = vrot.slane %v623_v32, 4  ;;  %v630_v40 = vsel %vm209_vm0, %v205_v27, 0.0  ;;  %v637_v41 = vsel %vm209_vm0, %v206_v28, 0.0 }
  0x7c   : > { %v321_v42 = vadd.f32 %v320_v34, %v319_v25  ;;  %v672_v43 = vmul.f32 0.125, %v314_v33  ;;  %v606_v44 = vadd.f32 %v605_v35, %v604_v29  ;;  %v618_v45 = vadd.f32 %v617_v36, %v616_v4  ;;  %v161_v35 = vld [vmem:[%s1586_s6 + $0x80] sm:$0xff] }
  0x7d   : > { %v612_v48 = vrot.slane %v611_v37, 2  ;;  %v625_v49 = vadd.f32 %v624_v38, %v623_v32  ;;  %v631_v50 = vrot.slane %v630_v40, 4  ;;  %v638_v51 = vrot.slane %v637_v41, 4 }
  0x7e   : > { %v673_v52 = vmul.f32 0.125, %v321_v42  ;;  %v809_v53 = vsel %vm800_vm6, %v672_v43, %v808_v30  ;;  %v607_v55 = vrot.slane %v606_v44, 1  ;;  %v619_v57 = vrot.slane %v618_v45, 2 }
  0x7f   : > { %v613_v58 = vadd.f32 %v612_v48, %v611_v37  ;;  %v626_v59 = vrot.slane %v625_v49, 2  ;;  %v632_v60 = vadd.f32 %v631_v50, %v630_v40  ;;  %v639_v61 = vadd.f32 %v638_v51, %v637_v41  ;;  %v163_v50 = vld [vmem:[%s1586_s6 + $0x90] sm:$0xff] }
  0x80   : > { %v810_v62 = vsel %vm802_vm7, %v673_v52, %v809_v53  ;;  %v608_v1 = vadd.f32 %v607_v55, %v606_v44  ;;  %v620_v6 = vadd.f32 %v619_v57, %v618_v45  ;;  %v644_v8 = vsel %vm209_vm0, %v207_v47, 0.0  ;;  %v162_v45 = vld [vmem:[%s1586_s6 + $0x88] sm:$0xff] }
  0x81   : > { %v855_v9 = vsel %vm209_vm0, %v810_v62, 0  ;;  %v614_v10 = vrot.slane %v613_v58, 1  ;;  %v627_v12 = vadd.f32 %v626_v59, %v625_v49  ;;  %v633_v11 = vrot.slane %v632_v60, 2 }
  0x82   : > { %v1786_v14 = vand.u32 4294901760, %v855_v9  ;;  %v621_v16 = vrot.slane %v620_v6, 1  ;;  %v640_v17 = vrot.slane %v639_v61, 2  ;;  %v645_v18 = vrot.slane %v644_v8, 4 }
  0x83   : > { %v615_v19 = vadd.f32 %v614_v10, %v613_v58  ;;  %v628_v20 = vrot.slane %v627_v12, 1  ;;  %v634_v21 = vadd.f32 %v633_v11, %v632_v60  ;;  %v651_v23 = vsel %vm209_vm0, %v208_v0, 0.0  ;;  %v164_v58 = vld [vmem:[%s1586_s6 + $0x98] sm:$0xff] }
  0x84   : > { %v1790_v24 = vsub.f32 %v855_v9, %v1786_v14  ;;  %995 = vmatmul.f32.gmra.mxu1 %v1786_v14  ;;  %v622_v25 = vadd.f32 %v621_v16, %v620_v6  ;;  %v641_v26 = vadd.f32 %v640_v17, %v639_v61  ;;  %v646_v27 = vadd.f32 %v645_v18, %v644_v8  ;;  %v165_v61 = vld [vmem:[%s1586_s6 + $0xa0] sm:$0xff] }
  0x85   : > { %v629_v28 = vadd.f32 %v628_v20, %v627_v12  ;;  %v635_v29 = vrot.slane %v634_v21, 1  ;;  %v652_v30 = vrot.slane %v651_v23, 4  ;;  %v714_v31 = vmul.f32 0.125, %v608_v1  ;;  %v166_v12 = vld [vmem:[%s1586_s6 + $0xa8] sm:$0xff] }
  0x86   : > { %v899_v4 = vand.u32 4294901760, %v1790_v24  ;;  %v642_v32 = vrot.slane %v641_v26, 1  ;;  %v647_v33 = vrot.slane %v646_v27, 2  ;;  %v715_v34 = vmul.f32 0.125, %v615_v19 }
  0x87   : > { %v636_v36 = vadd.f32 %v635_v29, %v634_v21  ;;  %v653_v37 = vadd.f32 %v652_v30, %v651_v23  ;;  %v716_v38 = vmul.f32 0.125, %v622_v25  ;;  %v717_v40 = vmul.f32 0.125, %v629_v28  ;;  %v167_v25 = vld [vmem:[%s1586_s6 + $0xb0] sm:$0xff] }
  0x88   : > { %v900_v41 = vsub.f32 %v1790_v24, %v899_v4  ;;  %v643_v42 = vadd.f32 %v642_v32, %v641_v26  ;;  %v648_v43 = vadd.f32 %v647_v33, %v646_v27  ;;  %v846_v44 = vsel %vm790_vm1, %v715_v34, %v714_v31 }
  0x89   : > { %v654_v47 = vrot.slane %v653_v37, 2  ;;  %v718_v48 = vmul.f32 0.125, %v636_v36  ;;  %v847_v49 = vsel %vm792_vm2, %v716_v38, %v846_v44  ;;  %v322_v51 = vsel %vm209_vm0, %v161_v35, 0.0 }
  0x8a   : > { %v901_v52 = vand.u32 4294901760, %v900_v41  ;;  %v649_v53 = vrot.slane %v648_v43, 1  ;;  %v719_v55 = vmul.f32 0.125, %v643_v42  ;;  %v848_v57 = vsel %vm794_vm3, %v717_v40, %v847_v49 }
  0x8b   : > { %v655_v59 = vadd.f32 %v654_v47, %v653_v37  ;;  %v849_v60 = vsel %vm796_vm4, %v718_v48, %v848_v57  ;;  %v323_v62 = vrot.slane %v322_v51, 4  ;;  %v329_v0 = vsel %vm209_vm0, %v162_v45, 0.0  ;;  %v168_v48 = vld [vmem:[%s1586_s6 + $0xb8] sm:$0xff] }
  0x8c   : > { %902 = vmatmul.f32.gmra.mxu0 %v901_v52  ;;  %v650_v1 = vadd.f32 %v649_v53, %v648_v43  ;;  %v850_v6 = vsel %vm798_vm5, %v719_v55, %v849_v60  ;;  %v330_v8 = vrot.slane %v329_v0, 4  ;;  %v336_v9 = vsel %vm209_vm0, %v163_v50, 0.0 }
  0x8d   : > { %v656_v10 = vrot.slane %v655_v59, 1  ;;  %v324_v11 = vadd.f32 %v323_v62, %v322_v51  ;;  %v337_v16 = vrot.slane %v336_v9, 4  ;;  %v343_v17 = vsel %vm209_vm0, %v164_v58, 0.0 }
  0x8e   : > { %v720_v18 = vmul.f32 0.125, %v650_v1  ;;  %v331_v19 = vadd.f32 %v330_v8, %v329_v0  ;;  %v344_v20 = vrot.slane %v343_v17, 4  ;;  %v350_v21 = vsel %vm209_vm0, %v165_v61, 0.0 }
  0x8f   : > { %v657_v23 = vadd.f32 %v656_v10, %v655_v59  ;;  %v325_v26 = vrot.slane %v324_v11, 2  ;;  %v338_v27 = vadd.f32 %v337_v16, %v336_v9  ;;  %v351_v28 = vrot.slane %v350_v21, 4 }
  0x90   : > { %v851_v29 = vsel %vm800_vm6, %v720_v18, %v850_v6  ;;  %v332_v30 = vrot.slane %v331_v19, 2  ;;  %v345_v31 = vadd.f32 %v344_v20, %v343_v17  ;;  %v357_v32 = vsel %vm209_vm0, %v166_v12, 0.0 }
  0x91   : > { %v721_v33 = vmul.f32 0.125, %v657_v23  ;;  %v326_v34 = vadd.f32 %v325_v26, %v324_v11  ;;  %v339_v35 = vrot.slane %v338_v27, 2  ;;  %v352_v36 = vadd.f32 %v351_v28, %v350_v21  ;;  %v170_v26 = vld [vmem:[%s1586_s6 + $0xc8] sm:$0xff] }
  0x92   : > { %v333_v37 = vadd.f32 %v332_v30, %v331_v19  ;;  %v346_v38 = vrot.slane %v345_v31, 2  ;;  %v358_v40 = vrot.slane %v357_v32, 4  ;;  %v364_v41 = vsel %vm209_vm0, %v167_v25, 0.0  ;;  %v169_v25 = vld [vmem:[%s1586_s6 + $0xc0] sm:$0xff] }
  0x93   : > { %v852_v42 = vsel %vm802_vm7, %v721_v33, %v851_v29  ;;  %v327_v43 = vrot.slane %v326_v34, 1  ;;  %v340_v44 = vadd.f32 %v339_v35, %v338_v27  ;;  %v353_v45 = vrot.slane %v352_v36, 2  ;;  %v171_v35 = vld [vmem:[%s1586_s6 + $0xd0] sm:$0xff] }
  0x94   : > { %v867_v47 = vsel %vm209_vm0, %v852_v42, 0  ;;  %v334_v49 = vrot.slane %v333_v37, 1  ;;  %v347_v50 = vadd.f32 %v346_v38, %v345_v31  ;;  %v359_v51 = vadd.f32 %v358_v40, %v357_v32 }
  0x95   : > { %v1820_v52 = vand.u32 4294901760, %v867_v47  ;;  %v328_v53 = vadd.f32 %v327_v43, %v326_v34  ;;  %v341_v55 = vrot.slane %v340_v44, 1  ;;  %v354_v57 = vadd.f32 %v353_v45, %v352_v36  ;;  %v172_v36 = vld [vmem:[%s1586_s6 + $0xd8] sm:$0xff] }
  0x96   : > { %v335_v58 = vadd.f32 %v334_v49, %v333_v37  ;;  %v348_v59 = vrot.slane %v347_v50, 1  ;;  %v360_v60 = vrot.slane %v359_v51, 2  ;;  %v365_v61 = vrot.slane %v364_v41, 4 }
  0x97   : > { %v1823_v62 = vsub.f32 %v867_v47, %v1820_v52  ;;  %1019 = vmatmul.f32.gmra.mxu3 %v1820_v52  ;;  %v342_v0 = vadd.f32 %v341_v55, %v340_v44  ;;  %v355_v1 = vrot.slane %v354_v57, 1  ;;  %v371_v6 = vsel %vm209_vm0, %v168_v48, 0.0  ;;  %v173_v47 = vld [vmem:[%s1586_s6 + $0xe0] sm:$0xff] }
  0x98   : > { %v349_v8 = vadd.f32 %v348_v59, %v347_v50  ;;  %v361_v9 = vadd.f32 %v360_v60, %v359_v51  ;;  %v366_v10 = vadd.f32 %v365_v61, %v364_v41  ;;  %v372_v12 = vrot.slane %v371_v6, 4 }
  0x99   : > { %v947_v11 = vand.u32 4294901760, %v1823_v62  ;;  %v356_v16 = vadd.f32 %v355_v1, %v354_v57  ;;  %v674_v17 = vmul.f32 0.125, %v328_v53  ;;  %v675_v18 = vmul.f32 0.125, %v335_v58  ;;  %v174_v58 = vld [vmem:[%s1586_s6 + $0xe8] sm:$0xff] }
  0x9a   : > { %v362_v19 = vrot.slane %v361_v9, 1  ;;  %v367_v20 = vrot.slane %v366_v10, 2  ;;  %v373_v21 = vadd.f32 %v372_v12, %v371_v6  ;;  %v676_v23 = vmul.f32 0.125, %v342_v0  ;;  %v175_v12 = vld [vmem:[%s1586_s6 + $0xf0] sm:$0xff] }
  0x9b   : > { %v948_v27 = vsub.f32 %v1823_v62, %v947_v11  ;;  %v677_v28 = vmul.f32 0.125, %v349_v8  ;;  %v678_v29 = vmul.f32 0.125, %v356_v16  ;;  %v811_v30 = vsel %vm790_vm1, %v675_v18, %v674_v17 }
  0x9c   : > { %v363_v31 = vadd.f32 %v362_v19, %v361_v9  ;;  %v368_v32 = vadd.f32 %v367_v20, %v366_v10  ;;  %v374_v33 = vrot.slane %v373_v21, 2  ;;  %v812_v34 = vsel %vm792_vm2, %v676_v23, %v811_v30 }
  0x9d   : > { %v949_v37 = vand.u32 4294901760, %v948_v27  ;;  %v813_v38 = vsel %vm794_vm3, %v677_v28, %v812_v34  ;;  %v378_v40 = vsel %vm209_vm0, %v169_v25, 0.0  ;;  %v385_v41 = vsel %vm209_vm0, %v170_v26, 0.0 }
  0x9e   : > { %v369_v42 = vrot.slane %v368_v32, 1  ;;  %v375_v43 = vadd.f32 %v374_v33, %v373_v21  ;;  %v679_v44 = vmul.f32 0.125, %v363_v31  ;;  %v814_v45 = vsel %vm796_vm4, %v678_v29, %v813_v38  ;;  %v176_v38 = vld [vmem:[%s1586_s6 + $0xf8] sm:$0xff] }
  0x9f   : > { %950 = vmatmul.f32.gmra.mxu2 %v949_v37  ;;  %v379_v48 = vrot.slane %v378_v40, 4  ;;  %v386_v49 = vrot.slane %v385_v41, 4  ;;  %v392_v50 = vsel %vm209_vm0, %v171_v35, 0.0  ;;  %v399_v51 = vsel %vm209_vm0, %v172_v36, 0.0  ;;  %1111 = vmatmul.f32.vlgmr.msrb.gmra.mxu3 %v891_v22 }
  0xa0   : > { %v370_v53 = vadd.f32 %v369_v42, %v368_v32  ;;  %v376_v55 = vrot.slane %v375_v43, 1  ;;  %v815_v57 = vsel %vm798_vm5, %v679_v44, %v814_v45  ;;  %v393_v59 = vrot.slane %v392_v50, 4 }
  0xa1   : > { %v380_v60 = vadd.f32 %v379_v48, %v378_v40  ;;  %v387_v61 = vadd.f32 %v386_v49, %v385_v41  ;;  %v400_v0 = vrot.slane %v399_v51, 4  ;;  %v406_v1 = vsel %vm209_vm0, %v173_v47, 0.0 }
  0xa2   : > { %v377_v6 = vadd.f32 %v376_v55, %v375_v43  ;;  %v680_v8 = vmul.f32 0.125, %v370_v53  ;;  %v394_v9 = vadd.f32 %v393_v59, %v392_v50  ;;  %v407_v10 = vrot.slane %v406_v1, 4 }
  0xa3   : > { %v381_v16 = vrot.slane %v380_v60, 2  ;;  %v388_v17 = vrot.slane %v387_v61, 2  ;;  %v401_v18 = vadd.f32 %v400_v0, %v399_v51  ;;  %v413_v22 = vsel %vm209_vm0, %v174_v58, 0.0 }
  0xa4   : > { %v681_v19 = vmul.f32 0.125, %v377_v6  ;;  %v816_v20 = vsel %vm800_vm6, %v680_v8, %v815_v57  ;;  %v395_v21 = vrot.slane %v394_v9, 2  ;;  %v408_v23 = vadd.f32 %v407_v10, %v406_v1 }
  0xa5   : > { %v382_v25 = vadd.f32 %v381_v16, %v380_v60  ;;  %v389_v26 = vadd.f32 %v388_v17, %v387_v61  ;;  %v402_v27 = vrot.slane %v401_v18, 2  ;;  %v414_v28 = vrot.slane %v413_v22, 4 }
  0xa6   : > { %v817_v29 = vsel %vm802_vm7, %v681_v19, %v816_v20  ;;  %v396_v30 = vadd.f32 %v395_v21, %v394_v9  ;;  %v409_v31 = vrot.slane %v408_v23, 2  ;;  %v420_v32 = vsel %vm209_vm0, %v175_v12, 0.0 }
  0xa7   : > { %v857_v33 = vsel %vm209_vm0, %v817_v29, 0  ;;  %1049 = vmatmul.f32.vlgmr.msrb.gmra.mxu2 %v1721_v13  ;;  %v383_v34 = vrot.slane %v382_v25, 1  ;;  %v390_v35 = vrot.slane %v389_v26, 1  ;;  %v403_v36 = vadd.f32 %v402_v27, %v401_v18  ;;  %1117 = vmatmul.f32.gmra.mxu3 %v899_v4 }
  0xa8   : > { %v1858_v37 = vand.u32 4294901760, %v857_v33  ;;  %v397_v40 = vrot.slane %v396_v30, 1  ;;  %v410_v41 = vadd.f32 %v409_v31, %v408_v23  ;;  %v415_v42 = vadd.f32 %v414_v28, %v413_v22 }
  0xa9   : > { %v384_v43 = vadd.f32 %v383_v34, %v382_v25  ;;  %v391_v44 = vadd.f32 %v390_v35, %v389_v26  ;;  %v404_v45 = vrot.slane %v403_v36, 1  ;;  %v421_v47 = vrot.slane %v420_v32, 4 }
  0xaa   : > { %v906_v48 = vsub.f32 %v857_v33, %v1858_v37  ;;  %999 = vmatmul.f32.gmra.mxu1 %v1858_v37  ;;  %v398_v13 = vadd.f32 %v397_v40, %v396_v30  ;;  %v411_v49 = vrot.slane %v410_v41, 1  ;;  %v416_v50 = vrot.slane %v415_v42, 2 }
  0xab   : > { %v405_v51 = vadd.f32 %v404_v45, %v403_v36  ;;  %v422_v53 = vadd.f32 %v421_v47, %v420_v32  ;;  %v427_v4 = vsel %vm209_vm0, %v176_v38, 0.0  ;;  %v682_v55 = vmul.f32 0.125, %v384_v43 }
  0xac   : > { %v907_v57 = vand.u32 4294901760, %v906_v48  ;;  %v412_v58 = vadd.f32 %v411_v49, %v410_v41  ;;  %v417_v59 = vadd.f32 %v416_v50, %v415_v42  ;;  %v428_v60 = vrot.slane %v427_v4, 4 }
  0xad   : > { %v423_v61 = vrot.slane %v422_v53, 2  ;;  %v683_v0 = vmul.f32 0.125, %v391_v44  ;;  %v684_v1 = vmul.f32 0.125, %v398_v13  ;;  %v685_v6 = vmul.f32 0.125, %v405_v51 }
  0xae   : > { %v908_v8 = vsub.f32 %v906_v48, %v907_v57  ;;  %v418_v9 = vrot.slane %v417_v59, 1  ;;  %v429_v10 = vadd.f32 %v428_v60, %v427_v4  ;;  %v686_v12 = vmul.f32 0.125, %v412_v58 }
  0xaf   : > { %v424_v16 = vadd.f32 %v423_v61, %v422_v53  ;;  %v818_v17 = vsel %vm790_vm1, %v683_v0, %v682_v55  ;;  %1054 = vmatmul.f32.gmra.mxu2 %v1790_v24  ;;  %1123 = vmatmul.f32.gmra.mxu3 %v907_v57 }
  0xb0   : > { %v909_v18 = vand.u32 4294901760, %v908_v8  ;;  %v419_v22 = vadd.f32 %v418_v9, %v417_v59  ;;  %v430_v19 = vrot.slane %v429_v10, 2  ;;  %v819_v20 = vsel %vm792_vm2, %v684_v1, %v818_v17 }
  0xb1   : > { %v425_v21 = vrot.slane %v424_v16, 1  ;;  %v820_v23 = vsel %vm794_vm3, %v685_v6, %v819_v20 }
  0xb2   : > { %910 = vmatmul.f32.gmra.mxu0 %v909_v18  ;;  %v431_v25 = vadd.f32 %v430_v19, %v429_v10  ;;  %v687_v26 = vmul.f32 0.125, %v419_v22  ;;  %v821_v27 = vsel %vm796_vm4, %v686_v12, %v820_v23 }
  0xb3   : > { %v426_v28 = vadd.f32 %v425_v21, %v424_v16 }
  0xb4   : > { %v432_v29 = vrot.slane %v431_v25, 1  ;;  %v822_v30 = vsel %vm798_vm5, %v687_v26, %v821_v27 }
  0xb5   : > { %v688_v31 = vmul.f32 0.125, %v426_v28 }
  0xb6   : > { %v433_v24 = vadd.f32 %v432_v29, %v431_v25 }
  0xb7   : > { %v823_v32 = vsel %vm800_vm6, %v688_v31, %v822_v30  ;;  %1059 = vmatmul.f32.gmra.mxu2 %v906_v48 }
  0xb8   : > { %v689_v33 = vmul.f32 0.125, %v433_v24 }
  0xba   : > { %v824_v34 = vsel %vm802_vm7, %v689_v33, %v823_v32 }
  0xbb   : > { %v859_v35 = vsel %vm209_vm0, %v824_v34, 0 }
  0xbc   : > { %v913_v36 = vand.u32 4294901760, %v859_v35 }
  0xbe   : > { %v914_v38 = vsub.f32 %v859_v35, %v913_v36  ;;  %1003 = vmatmul.f32.gmra.mxu1 %v913_v36 }
  0xc0   : > { %v915_v40 = vand.u32 4294901760, %v914_v38  ;;  %1064 = vmatmul.f32.gmra.mxu2 %v914_v38 }
  0xc2   : > { %v916_v41 = vsub.f32 %v914_v38, %v915_v40  ;;  %1129 = vmatmul.f32.gmra.mxu3 %v915_v40 }
  0xc4   : > { %v917_v42 = vand.u32 4294901760, %v916_v41 }
  0xc6   : > { %918 = vmatmul.f32.gmra.mxu0 %v917_v42  ;;  %1239 = vmatmul.f32.vlgmr.msrb.gmra.mxu1 %v1717_v63 }
  0xc8   : > { %1069 = vmatmul.f32.gmra.mxu2 %v1653_v15  ;;  %v927_v15 = vpop.f32.mrf.mxu2 }
  0xca   : > { %1135 = vmatmul.f32.gmra.mxu3 %v923_v3  ;;  %v1008_v3 = vpop.f32.mrf.mxu3 }
  0xcb   : > { %v1009_v29 = vadd.f32 %v1008_v3, %v927_v15 }
  0xce   : > { %1186 = vmatmul.f32.vlgmr.msrb.gmra.mxu0 %v1717_v63  ;;  %1243 = vmatmul.f32.gmra.mxu1 %v1786_v14 }
  0xd0   : > { %1074 = vmatmul.f32.gmra.mxu2 %v1688_v7 }
  0xd2   : > { %1141 = vmatmul.f32.gmra.mxu3 %v931_v54  ;;  %v1901_v54 = vpop.f32.mrf.mxu3 }
  0xd5   : > { %v1899_v7 = vpop.f32.mrf.mxu2 }
  0xd6   : > { %1190 = vmatmul.f32.gmra.mxu0 %v1786_v14  ;;  %1247 = vmatmul.f32.gmra.mxu1 %v1858_v37  ;;  %v1013_v38 = vadd.f32 %v1901_v54, %v1899_v7 }
  0xd8   : > { %1079 = vmatmul.f32.gmra.mxu2 %v1756_v46 }
  0xda   : > { %1147 = vmatmul.f32.gmra.mxu3 %v939_v56  ;;  %v992_v63 = vpop.f32.mrf.mxu1 }
  0xde   : > { %1194 = vmatmul.f32.gmra.mxu0 %v1858_v37  ;;  %1251 = vmatmul.f32.gmra.mxu1 %v913_v36 }
  0xe0   : > { %1084 = vmatmul.f32.gmra.mxu2 %v1823_v62 }
  0xe2   : > { %1153 = vmatmul.f32.gmra.mxu3 %v947_v11 }
  0xe6   : > { %1198 = vmatmul.f32.gmra.mxu0 %v913_v36  ;;  %1255 = vmatmul.f32.gmra.mxu1 %v1648_v2 }
  0xee   : > { %1202 = vmatmul.f32.gmra.mxu0 %v1648_v2  ;;  %1259 = vmatmul.f32.gmra.mxu1 %v1684_v39 }
  0xf4   : > { %v1905_v46 = vpop.f32.mrf.mxu3 }
  0xf6   : > { %1206 = vmatmul.f32.gmra.mxu0 %v1684_v39  ;;  %1263 = vmatmul.f32.gmra.mxu1 %v1752_v5  ;;  %v895_v39 = vpop.f32.mrf.mxu0 }
  0xf7   : > { %v993_v48 = vadd.f32 %v992_v63, %v895_v39 }
  0xfc   : > { %v1903_v2 = vpop.f32.mrf.mxu2 }
  0xfe   : > { %1210 = vmatmul.f32.gmra.mxu0 %v1752_v5  ;;  %1267 = vmatmul.f32.gmra.mxu1 %v1820_v52 }
 0x101   : > { %v996_v56 = vpop.f32.mrf.mxu1 }
 0x106   : > { %1214 = vmatmul.f32.gmra.mxu0 %v1820_v52 }
 0x109   : > { %v903_v62 = vpop.f32.mrf.mxu0 }
 0x10a   : > { %v997_v4 = vadd.f32 %v996_v56, %v903_v62  ;;  %v1017_v56 = vadd.f32 %v1905_v46, %v1903_v2 }
 0x11a   : > { %v1909_v5 = vpop.f32.mrf.mxu3 }
 0x122   : > { %v1907_v14 = vpop.f32.mrf.mxu2  ;;  %v1112_v37 = vpop.f32.mrf.mxu3 }
 0x127   : > { %v1000_v52 = vpop.f32.mrf.mxu1 }
 0x12a   : > { %v1050_v11 = vpop.f32.mrf.mxu2  ;;  %v1118_v47 = vpop.f32.mrf.mxu3 }
 0x12b   : > { %v1051_v50 = vadd.f32 %v1050_v11, %v993_v48 }
 0x12d   : > { %v1113_v53 = vadd.f32 %v1112_v37, %v1051_v50 }
 0x12f   : > { %v911_v43 = vpop.f32.mrf.mxu0 }
 0x130   : > { %v1001_v6 = vadd.f32 %v1000_v52, %v911_v43 }
 0x132   : > { %v1055_v45 = vpop.f32.mrf.mxu2  ;;  %v1124_v55 = vpop.f32.mrf.mxu3 }
 0x133   : > { %v1056_v60 = vadd.f32 %v1055_v45, %v997_v4  ;;  %v1021_v45 = vadd.f32 %v1909_v5, %v1907_v14 }
 0x135   : > { %v1119_v0 = vadd.f32 %v1118_v47, %v1056_v60 }
 0x13a   : > { %v1060_v51 = vpop.f32.mrf.mxu2 }
 0x13b   : > { %v1004_v44 = vpop.f32.mrf.mxu1  ;;  %v1061_v12 = vadd.f32 %v1060_v51, %v1001_v6 }
 0x13d   : > { %v1125_v18 = vadd.f32 %v1124_v55, %v1061_v12 }
 0x143   : > { %v919_v13 = vpop.f32.mrf.mxu0  ;;  %v1240_v49 = vpop.f32.mrf.mxu1 }
 0x144   : > { %v1065_v1 = vpop.f32.mrf.mxu2  ;;  %v1005_v22 = vadd.f32 %v1004_v44, %v919_v13 }
 0x145   : > { %v1130_v16 = vpop.f32.mrf.mxu3 }
 0x146   : > { %v1066_v25 = vadd.f32 %v1065_v1, %v1005_v22 }
 0x148   : > { %v1131_v28 = vadd.f32 %v1130_v16, %v1066_v25 }
 0x14b   : > { %v1187_v57 = vpop.f32.mrf.mxu0  ;;  %v1244_v58 = vpop.f32.mrf.mxu1 }
 0x14c   : > { %v1188_v59 = vadd.f32 %v1187_v57, %v1113_v53  ;;  %v1070_v19 = vpop.f32.mrf.mxu2 }
 0x14d   : > { %v1136_v27 = vpop.f32.mrf.mxu3  ;;  %v1071_v24 = vadd.f32 %v1070_v19, %v1009_v29 }
 0x14e   : > { %v1241_v61 = vadd.f32 %v1240_v49, %v1188_v59 }
 0x14f   : > { %v1137_v35 = vadd.f32 %v1136_v27, %v1071_v24 }
 0x150   : > { %1271 = vst [vmem:[%s1914_s13] sm:$0xff] %v1241_v61 }
 0x153   : > { %v1191_v8 = vpop.f32.mrf.mxu0  ;;  %v1248_v9 = vpop.f32.mrf.mxu1 }
 0x154   : > { %v1192_v10 = vadd.f32 %v1191_v8, %v1119_v0  ;;  %v1075_v33 = vpop.f32.mrf.mxu2 }
 0x155   : > { %v1142_v36 = vpop.f32.mrf.mxu3  ;;  %v1076_v42 = vadd.f32 %v1075_v33, %v1013_v38 }
 0x156   : > { %v1245_v17 = vadd.f32 %v1244_v58, %v1192_v10 }
 0x157   : > { %v1143_v3 = vadd.f32 %v1142_v36, %v1076_v42 }
 0x158   : > { %1272 = vst [vmem:[%s1914_s13 + $0x8] sm:$0xff] %v1245_v17 }
 0x15b   : > { %v1195_v20 = vpop.f32.mrf.mxu0  ;;  %v1252_v21 = vpop.f32.mrf.mxu1 }
 0x15c   : > { %v1196_v23 = vadd.f32 %v1195_v20, %v1125_v18  ;;  %v1080_v15 = vpop.f32.mrf.mxu2 }
 0x15d   : > { %v1148_v52 = vpop.f32.mrf.mxu3  ;;  %v1081_v37 = vadd.f32 %v1080_v15, %v1017_v56 }
 0x15e   : > { %v1249_v26 = vadd.f32 %v1248_v9, %v1196_v23 }
 0x15f   : > { %v1149_v7 = vadd.f32 %v1148_v52, %v1081_v37 }
 0x160   : > { %1273 = vst [vmem:[%s1914_s13 + $0x10] sm:$0xff] %v1249_v26 }
 0x163   : > { %v1199_v30 = vpop.f32.mrf.mxu0  ;;  %v1256_v32 = vpop.f32.mrf.mxu1 }
 0x164   : > { %v1200_v31 = vadd.f32 %v1199_v30, %v1131_v28  ;;  %v1085_v44 = vpop.f32.mrf.mxu2 }
 0x165   : > { %v1086_v2 = vadd.f32 %v1085_v44, %v1021_v45  ;;  %v1154_v46 = vpop.f32.mrf.mxu3 }
 0x166   : > { %v1253_v34 = vadd.f32 %v1252_v21, %v1200_v31 }
 0x167   : > { %v1155_v49 = vadd.f32 %v1154_v46, %v1086_v2 }
 0x168   : > { %1274 = vst [vmem:[%s1914_s13 + $0x18] sm:$0xff] %v1253_v34 }
 0x16b   : > { %v1203_v40 = vpop.f32.mrf.mxu0  ;;  %v1260_v39 = vpop.f32.mrf.mxu1 }
 0x16c   : > { %v1204_v41 = vadd.f32 %v1203_v40, %v1137_v35 }
 0x16e   : > { %v1257_v63 = vadd.f32 %v1256_v32, %v1204_v41 }
 0x170   : > { %1275 = vst [vmem:[%s1914_s13 + $0x20] sm:$0xff] %v1257_v63 }
 0x173   : > { %v1207_v62 = vpop.f32.mrf.mxu0  ;;  %v1264_v54 = vpop.f32.mrf.mxu1 }
 0x174   : > { %v1208_v11 = vadd.f32 %v1207_v62, %v1143_v3 }
 0x176   : > { %v1261_v43 = vadd.f32 %v1260_v39, %v1208_v11 }
 0x178   : > { %1276 = vst [vmem:[%s1914_s13 + $0x28] sm:$0xff] %v1261_v43 }
 0x17b   : > { %v1211_v47 = vpop.f32.mrf.mxu0  ;;  %v1268_v51 = vpop.f32.mrf.mxu1 }
 0x17c   : > { %v1212_v48 = vadd.f32 %v1211_v47, %v1149_v7 }
 0x17e   : > { %v1265_v13 = vadd.f32 %v1264_v54, %v1212_v48 }
 0x180   : > { %1277 = vst [vmem:[%s1914_s13 + $0x30] sm:$0xff] %v1265_v13 }
 0x183   : > { %v1215_v50 = vpop.f32.mrf.mxu0 }
 0x184   : > { %v1216_v53 = vadd.f32 %v1215_v50, %v1155_v49 }
 0x186   : > { %v1269_v14 = vadd.f32 %v1268_v51, %v1216_v53 }
 0x188   : > { %1278 = vst [vmem:[%s1914_s13 + $0x38] sm:$0xff] %v1269_v14 }
 0x189   : > { %1446 = shalt.err (!%p1443_p3)
}
 0x18a   : > { %s1483_s3 = smov 128   ;;  %s1484_s4 = smov 8  }
 0x18b   : > { %1378 = dma.vmem_to_hbm [thread:$0]  (%p1535_p5), %s1293_s21, 1024, %s1295_s22, %s1280_s23, %s1483_s3, %s1483_s3, %s1484_s4  }
 0x18c PF: > { %p1384_p4 = scmp.ge.s32.totalorder %s1481_s12, 2  ;;  %s1309_s5 = sand.u32 1, %s1469_s9  }
 0x18d   : > { %s1310_s6 = scalar_lea.sflag [#allocation3], %s1309_s5 }
 0x18e   : > { %p1381_p7 = pnand %p1384_p4, %p1539_p6 }
 0x190   : > { %p1382_p8 = pneg %p1381_p7 }
 0x192   : > { %1464 = dma.done.wait (%p1382_p8), %s1310_s6, 1024  }
 0x193   : > { %1466 = vsyncadd (%p1382_p8), %s1310_s6, 4294966272  ;;  %p12_p9 = scmp.ge.s32.totalorder %s1523_s15, 4   ;;  %s1969_s9 = smov %s1473_s10 }
 0x194   : > { %s1970_s10 = smov %s1477_s11  ;;  %s1971_s11 = smov %s1533_s18 }
 0x195   : > { %s1972_s12 = smov %s1523_s15  ;;  %14 = sbr.rel (!%p12_p9) target bundleno = 3 (0x3), region = 63 }
 0x19a   :  { %1316 = vsyncpa [#allocation3], 1 }
 0x19b   :  { %1318 = vsyncpa [#allocation3 + $0x1], 1 }

</bundles_post_ra>
